<compile_context>
chip_gen: v6e
topology: v6e:2x2x1
jax: 0.10.0
libtpu: 0.0.40
codegen_flags: <defaults>
</compile_context>

<pallas_src>
import math
import functools

import jax
import jax.numpy as jnp
from jax.experimental import pallas as pl
from jax.experimental.pallas import tpu as pltpu


def _make_pe_table(max_len: int, d_model: int) -> jnp.ndarray:
    """Deterministic sinusoidal positional-encoding table, shape [max_len, d_model]."""
    position = jnp.arange(max_len, dtype=jnp.float32)[:, None]            # [L, 1]
    div_term = jnp.exp(jnp.arange(0, d_model, 2, dtype=jnp.float32)
                       * (-math.log(10000.0) / d_model))                  # [D/2]
    pe = jnp.zeros((max_len, d_model), dtype=jnp.float32)
    pe = pe.at[:, 0::2].set(jnp.sin(position * div_term))
    pe = pe.at[:, 1::2].set(jnp.cos(position * div_term))
    return pe


def _i32(v: int) -> jnp.ndarray:
    """Python int -> wrapped int32 constant (two's complement)."""
    v &= 0xFFFFFFFF
    if v >= (1 << 31):
        v -= (1 << 32)
    return jnp.int32(v)


def _pos_enc_kernel(seed_ref, x_ref, pe_ref, o_ref, *, p: float, training: bool):
    # x_ref / pe_ref / o_ref: (tS, C) lane-dense blocks, C = B * D.
    y = x_ref[...] + pe_ref[...]

    if training and p > 0.0:
        tS, C = y.shape
        row = jax.lax.broadcasted_iota(jnp.int32, (tS, C), 0)
        col = jax.lax.broadcasted_iota(jnp.int32, (tS, C), 1)
        blk = pl.program_id(0)
        seed = seed_ref[0]

        # Unique per-element counter; seed mixed in with a strong odd multiplier
        # so nearby (seed, block) pairs give unrelated streams.
        h = (blk * tS + row) * C + col
        h = h ^ (seed * _i32(0x9E3779B9))

        # murmur3-style integer finalizer; logical shifts emulated with masks so
        # everything stays in plain int32 VPU ops (xor / shift / mul).
        h = h ^ (jnp.right_shift(h, 16) & 0xFFFF)
        h = h * _i32(0x85EBCA6B)
        h = h ^ (jnp.right_shift(h, 13) & 0x7FFFF)
        h = h * _i32(0xC2B2AE35)
        h = h ^ (jnp.right_shift(h, 16) & 0xFFFF)

        # Integer-domain keep test on 31 random bits: P(keep) = 1 - p.
        # TODO(synk): RNG stream differs from torch.nn.Dropout (different PRNG),
        # but the distributional semantics (Bernoulli keep + 1/(1-p) scaling) match.
        thresh = min(max(int(round(p * (1 << 31))), 0), (1 << 31) - 1)
        keep = (h & 0x7FFFFFFF) >= thresh
        y = jnp.where(keep, y * (1.0 / (1.0 - p)), jnp.zeros_like(y))

    o_ref[...] = y.astype(o_ref.dtype)


def positional_encoding(x: jnp.ndarray,
                        pe_table: jnp.ndarray,
                        *,
                        p: float = 0.1,
                        training: bool = True,
                        seed: int = 0) -> jnp.ndarray:
    """x: [S, B, D]; pe_table: [max_len, D]. Returns dropout(x + pe[:S])."""
    S, B, D = x.shape
    assert pe_table.shape[1] == D and pe_table.shape[0] >= S
    C = B * D

    # Lane-dense 2D view: rows = sequence positions, columns = batch * embed.
    # pe is tiled across the batch in plain JAX so the kernel is a pure 2D add.
    x2 = x.reshape(S, C)
    pe_wide = jnp.tile(pe_table[:S], (1, B))                # (S, C)

    # Row tile ~2 MiB (mem-bound sweet spot), multiple of 8 sublanes.
    row_bytes = C * x2.dtype.itemsize
    target_block_bytes = 2 * 1024 * 1024
    tS = max(8, (target_block_bytes // row_bytes) // 8 * 8)
    tS = min(tS, (S + 7) // 8 * 8)
    grid0 = pl.cdiv(S, tS)
    S_pad = grid0 * tS
    if S_pad != S:
        x2 = jnp.pad(x2, ((0, S_pad - S), (0, 0)))
        pe_wide = jnp.pad(pe_wide, ((0, S_pad - S), (0, 0)))

    kernel = functools.partial(_pos_enc_kernel, p=float(p), training=bool(training))
    seed_arr = jnp.array([seed], dtype=jnp.int32)

    out = pl.pallas_call(
        kernel,
        out_shape=jax.ShapeDtypeStruct((S_pad, C), x.dtype),
        grid_spec=pltpu.PrefetchScalarGridSpec(
            num_scalar_prefetch=1,
            grid=(grid0,),
            in_specs=[
                pl.BlockSpec((tS, C), lambda i, seed: (i, 0)),   # x rows
                pl.BlockSpec((tS, C), lambda i, seed: (i, 0)),   # pe rows (tiled over batch)
            ],
            out_specs=pl.BlockSpec((tS, C), lambda i, seed: (i, 0)),
        ),
        compiler_params=pltpu.CompilerParams(
            # Counter-based RNG is order-independent -> safe to shard across
            # TensorCores (v7x has 2 TCs; free no-op on v5e/v6e).
            dimension_semantics=("parallel",),
            # 3 arrays x 2 buffers x ~2 MiB blocks ~= 12 MiB; 32 MiB is safe on
            # v7x (64 MiB physical) and lifts the default scoped cap elsewhere.
            vmem_limit_bytes=32 * 1024 * 1024,
        ),
    )(seed_arr, x2, pe_wide)

    if S_pad != S:
        out = out[:S]
    return out.reshape(S, B, D)


if __name__ == "__main__":
    S, B, D = 8, 2, 32
    max_len = 64
    p = 0.1

    key = jax.random.PRNGKey(0)
    x = jax.random.normal(key, (S, B, D), dtype=jnp.float32)
    pe_table = _make_pe_table(max_len, D)

    ref = x + pe_table[:S][:, None, :]

    # Eval mode: dropout is identity -> must match the pure-JAX reference.
    out_eval = jax.block_until_ready(positional_encoding(x, pe_table, p=p, training=False))
    assert out_eval.shape == (S, B, D)
    assert jnp.allclose(out_eval, ref, atol=1e-6, rtol=1e-6)

    # Training mode: inverted dropout -> every element is 0 or ref / (1 - p).
    out_train = jax.block_until_ready(
        positional_encoding(x, pe_table, p=p, training=True, seed=0))
    assert out_train.shape == (S, B, D)
    scaled = ref / (1.0 - p)
    ok = jnp.logical_or(out_train == 0.0,
                        jnp.isclose(out_train, scaled, atol=1e-5, rtol=1e-5))
    assert bool(jnp.all(ok))

    print("KERNEL_OK")
</pallas_src>

<mosaic_0001>
module attributes {stable_mosaic.version = 11 : i64} {
  func.func @_pos_enc_kernel(%arg0: i32, %arg1: memref<1xi32, #tpu.memory_space<smem>>, %arg2: memref<8x64xf32, #tpu.memory_space<vmem>>, %arg3: memref<8x64xf32, #tpu.memory_space<vmem>>, %arg4: memref<8x64xf32, #tpu.memory_space<vmem>>) attributes {dimension_semantics = [#tpu.dimension_semantics<parallel>], iteration_bounds = array<i64: 1>, scalar_prefetch = 1 : i64, scratch_operands = 0 : i64, tpu.core_type = #tpu.core_type<tc>, window_params = [{transform_indices = @transform_0, window_bounds = array<i64: 8, 64>}, {transform_indices = @transform_1, window_bounds = array<i64: 8, 64>}, {transform_indices = @transform_2, window_bounds = array<i64: 8, 64>}]} {
    %c0 = arith.constant 0 : index
    %c0_0 = arith.constant 0 : index
    %0 = vector.load %arg2[%c0, %c0_0] : memref<8x64xf32, #tpu.memory_space<vmem>>, vector<8x64xf32>
    %c0_1 = arith.constant 0 : index
    %c0_2 = arith.constant 0 : index
    %1 = vector.load %arg3[%c0_1, %c0_2] : memref<8x64xf32, #tpu.memory_space<vmem>>, vector<8x64xf32>
    %2 = arith.addf %0, %1 : vector<8x64xf32>
    %c0_3 = arith.constant 0 : index
    %c0_4 = arith.constant 0 : index
    %3 = vector.load %arg4[%c0_3, %c0_4] : memref<8x64xf32, #tpu.memory_space<vmem>>, vector<8x64xf32>
    tpu.vector_store %arg4[%c0_3, %c0_4], %2 {strides = array<i32>} : memref<8x64xf32, #tpu.memory_space<vmem>>, vector<8x64xf32>,
    return
  }
  func.func @transform_0(%arg0: i32, %arg1: memref<1xi32, #tpu.memory_space<smem>>) -> (i32, i32) {
    %c0_i32 = arith.constant 0 : i32
    %c0_i32_0 = arith.constant 0 : i32
    return %arg0, %c0_i32 : i32, i32
  }
  func.func @transform_1(%arg0: i32, %arg1: memref<1xi32, #tpu.memory_space<smem>>) -> (i32, i32) {
    %c0_i32 = arith.constant 0 : i32
    %c0_i32_0 = arith.constant 0 : i32
    return %arg0, %c0_i32 : i32, i32
  }
  func.func @transform_2(%arg0: i32, %arg1: memref<1xi32, #tpu.memory_space<smem>>) -> (i32, i32) {
    %c0_i32 = arith.constant 0 : i32
    %c0_i32_0 = arith.constant 0 : i32
    return %arg0, %c0_i32 : i32, i32
  }
}

</mosaic_0001>

<bundles_post_ra>
// kernel: tpu_custom_call.1
= control target key start
LH: loop header
LB: loop body
LE: loop exit
PB: predicated region body
PF: predicated region fallthrough
CT: control target
= control target key end

     0   :  { %9 = vsyncpa [#allocation5], 0  ;;  %s160_s0 = inlined_call_operand.<no memory space> [shape: s32[1], index: 0, kind: input, shape index: {}]   ;;  %s161_s1 = inlined_call_operand.hbm [shape: f32[8,64], index: 1, kind: input, shape index: {}]   ;;  %s162_s2 = inlined_call_operand.hbm [shape: f32[8,64], index: 2, kind: input, shape index: {}]   ;;  %s163_s3 = inlined_call_operand.hbm [shape: f32[8,64], index: 3, kind: output, shape index: {}]  }
   0x1   :  { %10 = vsyncpa [#allocation8], 0 }
   0x2   :  { %11 = vsyncpa [#allocation6], 0  ;;  %s128_s12 = smov [#allocation4]   ;;  %s129_s14 = smov [#allocation7]  }
   0x3   :  { %s18_s13 = sshll.u32 %s128_s12, 4  ;;  %s28_s15 = sshll.u32 %s129_s14, 4  ;;  %s19_s13 = int_to_ptr.vmem [resolvable:$true] %s18_s13  ;;  %s29_s15 = int_to_ptr.vmem [resolvable:$true] %s28_s15 }
   0x4   :  { %s70_s16 = scalar_lea.vmem %s19_s13, 128  ;;  %p75_p1 = scmp.lt.s32.totalorder %s19_s13, %s19_s13 }
   0x5   :  { %p71_p0 = scmp.ne.s32.totalorder %s19_s13, %s70_s16  ;;  %p76_p2 = scmp.lt.s32.totalorder %s70_s16, %s70_s16 }
   0x7   :  { %p77_p3 = por %p76_p2, %p75_p1 }
   0x9   :  { %p78_p4 = pnand %p77_p3, %p71_p0 }
   0xb   :  { %81 = shalt.err (!%p78_p4)
}
   0xc   :  { %21 = dma.hbm_to_vmem [thread:$0]  %s161_s1, 128, %s19_s13, [#allocation5]  }
   0xd   :  { %s90_s18 = scalar_lea.vmem %s29_s15, 128  ;;  %p95_p6 = scmp.lt.s32.totalorder %s29_s15, %s29_s15 }
   0xe   :  { %p91_p5 = scmp.ne.s32.totalorder %s29_s15, %s90_s18  ;;  %p96_p7 = scmp.lt.s32.totalorder %s90_s18, %s90_s18 }
  0x10   :  { %p97_p8 = por %p96_p7, %p95_p6 }
  0x12   :  { %p98_p9 = pnand %p97_p8, %p91_p5 }
  0x14   :  { %101 = shalt.err (!%p98_p9)
}
  0x15   :  { %31 = dma.hbm_to_vmem [thread:$0]  %s162_s2, 128, %s29_s15, [#allocation8]  }
  0x16   :  { %122 = dma.done.wait [#allocation5], 128  }
  0x17   :  { %123 = vsyncadd [#allocation5], 4294967168 }
  0x18   :  { %124 = dma.done.wait [#allocation8], 128  }
  0x19   :  { %125 = vsyncadd [#allocation8], 4294967168  ;;  %s130_s21 = smov [#allocation9]   ;;  %v38_v0 = vld [vmem:[#allocation4] sm:$0xff]  ;;  %v39_v1 = vld [vmem:[#allocation7] sm:$0xff]  ;;  %vm41_vm0 = vcmask 523264  }
  0x1a   :  { %s49_s22 = sshll.u32 %s130_s21, 4  ;;  %v40_v2 = vadd.f32 %v39_v1, %v38_v0  ;;  %s50_s22 = int_to_ptr.vmem [resolvable:$true] %s49_s22 }
  0x1b   :  { %s102_s1 = scalar_lea.vmem %s50_s22, 128  ;;  %p107_p11 = scmp.lt.s32.totalorder %s50_s22, %s50_s22 }
  0x1c   :  { %42 = vst.msk [vmem:[#allocation9] sm:$0xff] %vm41_vm0, %v40_v2  ;;  %p103_p10 = scmp.ne.s32.totalorder %s50_s22, %s102_s1  ;;  %p108_p12 = scmp.lt.s32.totalorder %s102_s1, %s102_s1 }
  0x1e   :  { %p109_p13 = por %p108_p12, %p107_p11 }
  0x20   :  { %p110_p0 = pnand %p109_p13, %p103_p10 }
  0x22   :  { %113 = shalt.err (!%p110_p0)
}
  0x23   :  { %52 = dma.vmem_to_hbm [thread:$0]  %s50_s22, 128, %s163_s3, [#allocation6]  }
  0x24   :  { %126 = dma.done.wait [#allocation6], 128  }
  0x25   :  { %127 = vsyncadd [#allocation6], 4294967168 }
  0x26   :  { %56 = vsyncpa [#allocation5], 1 }
  0x27   :  { %57 = vsyncpa [#allocation8], 1 }
  0x28   :  { %58 = vsyncpa [#allocation6], 1 }

</bundles_post_ra>
